<compile_context>
chip_gen: v5e
topology: v5e:2x2
jax: 0.10.0
libtpu: 0.0.40
codegen_flags: <defaults>
</compile_context>

<pallas_src>
import numpy as np
import jax
import jax.numpy as jnp
from jax.experimental import pallas as pl
from jax.experimental.pallas import tpu as pltpu

# ----------------------------------------------------------------------------
# Constants (deterministic, built in-script)
# ----------------------------------------------------------------------------
_idx = np.arange(8)
# C_MAT[m, n] = cos((2m+1) * n * pi / 16)
C_MAT = np.cos((2 * _idx[:, None] + 1) * _idx[None, :] * np.pi / 16).astype(np.float32)
_alpha = np.array([1.0 / np.sqrt(2)] + [1.0] * 7, dtype=np.float32)
SCALE8 = (np.outer(_alpha, _alpha) * 0.25).astype(np.float32)   # DCT output scale
ALPHA8 = np.outer(_alpha, _alpha).astype(np.float32)            # IDCT input scale

# Forward DCT tensordot, flattened:  T_DCT[(x,y),(u,v)] = C[x,u]*C[y,v]
T_DCT = np.einsum("xu,yv->xyuv", C_MAT, C_MAT).reshape(64, 64).astype(np.float32)
# Inverse DCT tensordot, flattened:  T_IDCT[(x,y),(u,v)] = C[u,x]*C[v,y]
T_IDCT = np.einsum("ca,db->abcd", C_MAT, C_MAT).reshape(64, 64).astype(np.float32)

SCALE_FLAT = SCALE8.reshape(64)
ALPHA_FLAT = ALPHA8.reshape(64)

# Fold the scale factors directly into the matmul constants.
TD64 = (T_DCT * SCALE_FLAT[None, :]).astype(np.float32)          # DCT incl. scale
TI64 = (0.25 * ALPHA_FLAT[:, None] * T_IDCT).astype(np.float32)  # IDCT incl. 0.25*alpha

# 128x128 block-diagonal versions: two 8x8 blocks per kernel row (lane-dense).
TD128 = np.zeros((128, 128), np.float32)
TD128[:64, :64] = TD64
TD128[64:, 64:] = TD64
TI128 = np.zeros((128, 128), np.float32)
TI128[:64, :64] = TI64
TI128[64:, 64:] = TI64

# Quantization tables (note the .T, matching make_quantization_tables)
Y_TABLE = np.array(
    [[16, 11, 10, 16, 24, 40, 51, 61],
     [12, 12, 14, 19, 26, 58, 60, 55],
     [14, 13, 16, 24, 40, 57, 69, 56],
     [14, 17, 22, 29, 51, 87, 80, 62],
     [18, 22, 37, 56, 68, 109, 103, 77],
     [24, 35, 55, 64, 81, 104, 113, 92],
     [49, 64, 78, 87, 103, 121, 120, 101],
     [72, 92, 95, 98, 112, 100, 103, 99]], dtype=np.float32).T
C_TABLE = np.full((8, 8), 99.0, dtype=np.float32)
C_TABLE[:4, :4] = np.array(
    [[17, 18, 24, 47],
     [18, 21, 26, 66],
     [24, 26, 56, 99],
     [47, 66, 99, 99]], dtype=np.float32).T
Y_TABLE_FLAT = Y_TABLE.reshape(64)
C_TABLE_FLAT = C_TABLE.reshape(64)

# Per-lane quant-table rows for the packed (2 blocks / 128 lanes) layout, with
# the 0.5 noise factor folded in:  noise = eps * rv * (0.5 * table).
TAB_Y_ROW = (0.5 * np.concatenate([Y_TABLE_FLAT, Y_TABLE_FLAT]))[None, :].astype(np.float32)
TAB_C_ROW = (0.5 * np.concatenate([C_TABLE_FLAT, C_TABLE_FLAT]))[None, :].astype(np.float32)

# Module-level device constants (uploaded once; constant-folded under jit).
TD128_DEV = jnp.asarray(TD128)
TI128_DEV = jnp.asarray(TI128)
TAB_Y_DEV = jnp.asarray(TAB_Y_ROW)
TAB_C_DEV = jnp.asarray(TAB_C_ROW)

BLOCK_TILE = 2048   # packed rows (2 blocks each) per grid step in the block kernel
COLOR_TILE = 2048   # 128-lane rows per grid step in the color-conversion kernels
_VMEM_LIMIT = 32 * 1024 * 1024   # explicit scoped-VMEM limit (v5e default is 16 MiB)


def _pick_row_tile(rows, max_tile):
    """Choose (row_tile, rows_padded) for a (rows, 128)-shaped operand.

    Prefers tiles that divide `rows` exactly (no jnp.pad full-copy pass), are
    multiples of 8 (sublane constraint) and keep the grid length >= 2 when the
    input is large enough (v7x shards the parallel axis over 2 TensorCores).
    """
    if rows <= max_tile:
        if rows >= 16 and rows % 16 == 0:
            return rows // 2, rows          # grid of 2, no padding
        return rows, rows                   # single block == full dim (allowed)
    t = max_tile - (max_tile % 8)
    while t >= 256:
        if rows % t == 0:
            return t, rows
        t -= 8
    # Rare fallback: no reasonable divisor -> pad (one extra input copy).
    rows_pad = ((rows + max_tile - 1) // max_tile) * max_tile
    return max_tile, rows_pad


# ----------------------------------------------------------------------------
# Pallas kernels
# ----------------------------------------------------------------------------
def _jpeg_block_kernel(x_ref, rv_ref, eps_ref, tab_ref, td_ref, ti_ref, o_ref):
    """DCT -> noisy quantize -> dequantize -> IDCT for packed 8x8 blocks.

    x_ref:   (T, 128) two 8x8 patches per row (row-major (w,h) per 64-lane half)
    rv_ref:  (T, 128) raw rounding variables, same packing as x
    eps_ref: (T, 2)   per-block epsilon (lanes 0-63 use col 0, lanes 64-127 col 1)
    tab_ref: (1, 128) 0.5 * quant table, tiled to the two 64-lane halves
    td_ref:  (128,128) block-diag forward DCT (scale folded in)
    ti_ref:  (128,128) block-diag inverse DCT (0.25*alpha folded in)
    """
    coef = jnp.dot(x_ref[...] - 128.0, td_ref[...],
                   preferred_element_type=jnp.float32)
    rows = x_ref.shape[0]
    lane = jax.lax.broadcasted_iota(jnp.int32, (rows, 128), 1)
    hi = (lane >= 64).astype(jnp.float32)
    e = eps_ref[...]                                   # (rows, 2)
    eps_full = e[:, 0:1] * (1.0 - hi) + e[:, 1:2] * hi  # (rows, 128)
    # quantize/dequantize: (coef/table + eps*0.5*rv)*table == coef + eps*rv*(0.5*table)
    dq = coef + eps_full * rv_ref[...] * tab_ref[...]
    o_ref[...] = jnp.dot(dq, ti_ref[...],
                         preferred_element_type=jnp.float32) + 128.0


def _rgb2ycbcr_kernel(x_ref, y_ref, cb_ref, cr_ref):
    # x_ref: (3, T, 128) channel planes of the same pixels (batch dim squeezed)
    r = x_ref[0]
    g = x_ref[1]
    b = x_ref[2]
    y_ref[...] = 0.299 * r + 0.587 * g + 0.114 * b
    cb_ref[...] = -0.168736 * r - 0.331264 * g + 0.5 * b + 128.0
    cr_ref[...] = 0.5 * r - 0.418688 * g - 0.081312 * b + 128.0


def _ycbcr2rgb_kernel(y_ref, cb_ref, cr_ref, o_ref):
    # o_ref: (3, T, 128) -> written straight into the NCHW output slab
    y = y_ref[...]
    cb = cb_ref[...] - 128.0
    cr = cr_ref[...] - 128.0
    o_ref[0] = jnp.clip(y + 1.402 * cr, 0.0, 255.0)
    o_ref[1] = jnp.clip(y - 0.344136 * cb - 0.714136 * cr, 0.0, 255.0)
    o_ref[2] = jnp.clip(y + 1.772 * cb, 0.0, 255.0)


# ----------------------------------------------------------------------------
# Pallas wrappers
# ----------------------------------------------------------------------------
def _rgb_to_ycbcr(x):
    """x: (B, 3, H, W) f32 -> (y, cb, cr) each (B, H, W) f32.  No transposes."""
    B, _, H, W = x.shape
    crows = (H * W) // 128
    tile, rows_pad = _pick_row_tile(crows, COLOR_TILE)
    xr = x.reshape(B, 3, crows, 128)                      # contiguous, free
    if rows_pad != crows:
        xr = jnp.pad(xr, ((0, 0), (0, 0), (0, rows_pad - crows), (0, 0)))

    in_spec = pl.BlockSpec((None, 3, tile, 128), lambda b, i: (b, 0, i, 0))
    out_spec = pl.BlockSpec((None, tile, 128), lambda b, i: (b, i, 0))
    y, cb, cr = pl.pallas_call(
        _rgb2ycbcr_kernel,
        out_shape=tuple(jax.ShapeDtypeStruct((B, rows_pad, 128), jnp.float32)
                        for _ in range(3)),
        grid=(B, rows_pad // tile),
        in_specs=[in_spec],
        out_specs=(out_spec, out_spec, out_spec),
        compiler_params=pltpu.CompilerParams(
            dimension_semantics=("parallel", "parallel"),
            vmem_limit_bytes=_VMEM_LIMIT),
    )(xr)
    if rows_pad != crows:
        y, cb, cr = y[:, :crows], cb[:, :crows], cr[:, :crows]
    return (y.reshape(B, H, W), cb.reshape(B, H, W), cr.reshape(B, H, W))


def _ycbcr_to_rgb(y, cb, cr):
    """y/cb/cr: (B, H, W) f32 -> (B, 3, H, W) f32 clamped RGB (direct NCHW write)."""
    B, H, W = y.shape
    crows = (H * W) // 128
    tile, rows_pad = _pick_row_tile(crows, COLOR_TILE)
    planes = []
    for t in (y, cb, cr):
        t = t.reshape(B, crows, 128)
        if rows_pad != crows:
            t = jnp.pad(t, ((0, 0), (0, rows_pad - crows), (0, 0)))
        planes.append(t)

    in_spec = pl.BlockSpec((None, tile, 128), lambda b, i: (b, i, 0))
    out_spec = pl.BlockSpec((None, 3, tile, 128), lambda b, i: (b, 0, i, 0))
    out = pl.pallas_call(
        _ycbcr2rgb_kernel,
        out_shape=jax.ShapeDtypeStruct((B, 3, rows_pad, 128), jnp.float32),
        grid=(B, rows_pad // tile),
        in_specs=[in_spec, in_spec, in_spec],
        out_specs=out_spec,
        compiler_params=pltpu.CompilerParams(
            dimension_semantics=("parallel", "parallel"),
            vmem_limit_bytes=_VMEM_LIMIT),
    )(*planes)
    if rows_pad != crows:
        out = out[:, :, :crows]
    return out.reshape(B, 3, H, W)


def _run_block_kernel(patches, rv, eps_pair, tab_row):
    """patches/rv: (rows,128); eps_pair: (rows,2); tab_row: (1,128) device const."""
    rows = patches.shape[0]
    tile, rows_pad = _pick_row_tile(rows, BLOCK_TILE)
    if rows_pad != rows:
        pad = rows_pad - rows
        patches = jnp.pad(patches, ((0, pad), (0, 0)))
        rv = jnp.pad(rv, ((0, pad), (0, 0)))
        eps_pair = jnp.pad(eps_pair, ((0, pad), (0, 0)))

    data_spec = pl.BlockSpec((tile, 128), lambda i: (i, 0))
    eps_spec = pl.BlockSpec((tile, 2), lambda i: (i, 0))
    tab_spec = pl.BlockSpec((1, 128), lambda i: (0, 0))
    mat_spec = pl.BlockSpec((128, 128), lambda i: (0, 0))
    out = pl.pallas_call(
        _jpeg_block_kernel,
        out_shape=jax.ShapeDtypeStruct((rows_pad, 128), jnp.float32),
        grid=(rows_pad // tile,),
        in_specs=[data_spec, data_spec, eps_spec, tab_spec, mat_spec, mat_spec],
        out_specs=data_spec,
        compiler_params=pltpu.CompilerParams(
            dimension_semantics=("parallel",),
            vmem_limit_bytes=_VMEM_LIMIT),
    )(patches, rv, eps_pair, tab_row, TD128_DEV, TI128_DEV)
    if rows_pad != rows:
        out = out[:rows]
    return out


def _prep_component(plane, rv, eps):
    """plane: (B,Hc,Wc) in (H,W) layout; rv: (B,nb,8,8); eps: (B,).

    Produces packed (rows,128) patches/rounding vars in the REFERENCE block
    order (blocks ordered wb-major, each block flattened (w-offset, h-offset)),
    plus the per-packed-row epsilon pairs.
    """
    B, Hc, Wc = plane.shape
    nb = (Hc // 8) * (Wc // 8)
    p = (plane.reshape(B, Hc // 8, 8, Wc // 8, 8)
              .transpose(0, 3, 1, 4, 2)               # (b, wb, hb, wi, hj)
              .reshape(B * nb, 64))
    r = rv.astype(jnp.float32).reshape(B * nb, 64)
    e = jnp.repeat(eps, nb)                           # (B*nb,) batch-major
    n = B * nb
    if n % 2:  # only when B and nb are both odd: pad one dummy block
        p = jnp.concatenate([p, jnp.zeros((1, 64), jnp.float32)], axis=0)
        r = jnp.concatenate([r, jnp.zeros((1, 64), jnp.float32)], axis=0)
        e = jnp.concatenate([e, jnp.zeros((1,), jnp.float32)], axis=0)
        n += 1
    return p.reshape(n // 2, 128), r.reshape(n // 2, 128), e.reshape(n // 2, 2), nb


def _unpatch(blocks64, B, Hc, Wc):
    """blocks64: (B*nb, 64) in reference block order -> plane (B, Hc, Wc)."""
    return (blocks64.reshape(B, Wc // 8, Hc // 8, 8, 8)  # (b, wb, hb, wi, hj)
                    .transpose(0, 2, 4, 1, 3)            # (b, hb, hj, wb, wi)
                    .reshape(B, Hc, Wc))


def jpeg_pallas(x, rounding_vars, epsilon):
    """x: (B, 3, H, W) NCHW; rounding_vars: list of 3 noise arrays; epsilon: (B,)."""
    B, C, H, W = x.shape
    assert C == 3
    # TODO(synk): replicate-pad + crop path for H/W not multiple of 16 not ported.
    assert H % 16 == 0 and W % 16 == 0

    xf = x.astype(jnp.float32)
    eps = epsilon.astype(jnp.float32)

    # ---- RGB -> YCbCr straight from NCHW channel planes (no transposes) ----
    y, cb, cr = _rgb_to_ycbcr(xf)                     # each (B, H, W)

    # ---- 4:2:0 chroma downsampling (avg_pool 2x2) ----
    # TODO(synk): fuse the 2x2 average / 2x nearest upsample into the color kernels.
    cb = cb.reshape(B, H // 2, 2, W // 2, 2).mean(axis=(2, 4))
    cr = cr.reshape(B, H // 2, 2, W // 2, 2).mean(axis=(2, 4))

    def run(plane, rv, tab_row):
        Bp, Hc, Wc = plane.shape
        p, r, e, nb = _prep_component(plane, rv, eps)
        out = _run_block_kernel(p, r, e, tab_row).reshape(-1, 64)
        if out.shape[0] != Bp * nb:
            out = out[: Bp * nb]
        return _unpatch(out, Bp, Hc, Wc)

    # ---- per-component fused DCT / noisy-quant / dequant / IDCT ----
    y = run(y, rounding_vars[0], TAB_Y_DEV)
    cb = run(cb, rounding_vars[1], TAB_C_DEV)
    cr = run(cr, rounding_vars[2], TAB_C_DEV)

    # ---- 4:2:0 chroma upsampling (nearest-neighbor 2x) ----
    cb = jnp.repeat(jnp.repeat(cb, 2, axis=1), 2, axis=2)
    cr = jnp.repeat(jnp.repeat(cr, 2, axis=1), 2, axis=2)

    # ---- YCbCr -> RGB + clamp, written directly into NCHW layout ----
    return _ycbcr_to_rgb(y, cb, cr)


# ----------------------------------------------------------------------------
# Pure-JAX reference (mirrors the PyTorch math) for the correctness check
# ----------------------------------------------------------------------------
def jpeg_ref(x, rounding_vars, epsilon):
    B, _, H, W = x.shape
    img = jnp.transpose(x.astype(jnp.float32), (0, 3, 2, 1))
    M = jnp.array([[0.299, 0.587, 0.114],
                   [-0.168736, -0.331264, 0.5],
                   [0.5, -0.418688, -0.081312]], jnp.float32)
    ycc = jnp.einsum("bwhc,jc->bwhj", img, M) + jnp.array([0.0, 128.0, 128.0], jnp.float32)
    y, cb, cr = ycc[..., 0], ycc[..., 1], ycc[..., 2]
    cb = cb.reshape(B, W // 2, 2, H // 2, 2).mean(axis=(2, 4))
    cr = cr.reshape(B, W // 2, 2, H // 2, 2).mean(axis=(2, 4))

    Cm = jnp.asarray(C_MAT)
    scale8 = jnp.asarray(SCALE8)
    alpha8 = jnp.asarray(ALPHA8)

    def comp(plane, rv, table):
        Bb, Hc, Wc = plane.shape
        p = plane.reshape(Bb, Hc // 8, 8, Wc // 8, 8).transpose(0, 1, 3, 2, 4)
        p = p.reshape(Bb, -1, 8, 8)
        d = jnp.einsum("bnxy,xu,yv->bnuv", p - 128.0, Cm, Cm) * scale8
        q = d / jnp.asarray(table) + epsilon[:, None, None, None] * 0.5 * rv.astype(jnp.float32)
        dq = q * jnp.asarray(table)
        idct = 0.25 * jnp.einsum("bnxy,ux,vy->bnuv", dq * alpha8, Cm, Cm) + 128.0
        idct = idct.reshape(Bb, Hc // 8, Wc // 8, 8, 8).transpose(0, 1, 3, 2, 4)
        return idct.reshape(Bb, Hc, Wc)

    y = comp(y, rounding_vars[0], Y_TABLE)
    cb = comp(cb, rounding_vars[1], C_TABLE)
    cr = comp(cr, rounding_vars[2], C_TABLE)
    cb = jnp.repeat(jnp.repeat(cb, 2, axis=1), 2, axis=2)
    cr = jnp.repeat(jnp.repeat(cr, 2, axis=1), 2, axis=2)
    ycc2 = jnp.stack([y, cb, cr], axis=-1)
    Mi = jnp.array([[1.0, 0.0, 1.402],
                    [1.0, -0.344136, -0.714136],
                    [1.0, 1.772, 0.0]], jnp.float32)
    rgb = jnp.einsum("bwhc,jc->bwhj",
                     ycc2 + jnp.array([0.0, -128.0, -128.0], jnp.float32), Mi)
    rgb = jnp.clip(rgb, 0.0, 255.0)
    return jnp.transpose(rgb, (0, 3, 2, 1))


# ----------------------------------------------------------------------------
if __name__ == "__main__":
    key = jax.random.PRNGKey(0)
    k1, k2, k3, k4, k5 = jax.random.split(key, 5)

    B, H, W = 2, 16, 16
    x = jax.random.uniform(k1, (B, 3, H, W), jnp.float32, 0.0, 255.0)
    n_y = (H // 8) * (W // 8)          # luma 8x8 blocks per image
    n_c = (H // 16) * (W // 16)        # chroma 8x8 blocks per image (4:2:0)
    rounding_vars = [
        jax.random.uniform(k2, (B, n_y, 8, 8), jnp.float32),
        jax.random.uniform(k3, (B, n_c, 8, 8), jnp.float32),
        jax.random.uniform(k4, (B, n_c, 8, 8), jnp.float32),
    ]
    epsilon = jax.random.uniform(k5, (B,), jnp.float32, 0.5, 2.0)

    jpeg_jit = jax.jit(jpeg_pallas)
    out = jax.block_until_ready(jpeg_jit(x, rounding_vars, epsilon))
    ref = jax.block_until_ready(jpeg_ref(x, rounding_vars, epsilon))

    assert out.shape == (B, 3, H, W), out.shape
    assert np.all(np.isfinite(np.asarray(out)))
    np.testing.assert_allclose(np.asarray(out), np.asarray(ref), rtol=1e-3, atol=0.5)
    print("KERNEL_OK")
</pallas_src>

<mosaic_0001>
module attributes {stable_mosaic.version = 11 : i64} {
  func.func @_jpeg_block_kernel(%arg0: i32, %arg1: memref<4x128xf32, #tpu.memory_space<vmem>>, %arg2: memref<4x128xf32, #tpu.memory_space<vmem>>, %arg3: memref<4x2xf32, #tpu.memory_space<vmem>>, %arg4: memref<1x128xf32, #tpu.memory_space<vmem>>, %arg5: memref<128x128xf32, #tpu.memory_space<vmem>>, %arg6: memref<128x128xf32, #tpu.memory_space<vmem>>, %arg7: memref<4x128xf32, #tpu.memory_space<vmem>>) attributes {dimension_semantics = [#tpu.dimension_semantics<parallel>], iteration_bounds = array<i64: 1>, scalar_prefetch = 0 : i64, scratch_operands = 0 : i64, tpu.core_type = #tpu.core_type<tc>, window_params = [{transform_indices = @transform_0, window_bounds = array<i64: 4, 128>}, {transform_indices = @transform_1, window_bounds = array<i64: 4, 128>}, {transform_indices = @transform_2, window_bounds = array<i64: 4, 2>}, {pipeline_mode = #tpu.pipeline_mode<synchronous>, transform_indices = @transform_3, window_bounds = array<i64: 1, 128>}, {pipeline_mode = #tpu.pipeline_mode<synchronous>, transform_indices = @transform_4, window_bounds = array<i64: 128, 128>}, {pipeline_mode = #tpu.pipeline_mode<synchronous>, transform_indices = @transform_5, window_bounds = array<i64: 128, 128>}, {transform_indices = @transform_6, window_bounds = array<i64: 4, 128>}]} {
    %c0 = arith.constant 0 : index
    %c0_0 = arith.constant 0 : index
    %0 = vector.load %arg1[%c0, %c0_0] : memref<4x128xf32, #tpu.memory_space<vmem>>, vector<4x128xf32>
    %cst = arith.constant 1.280000e+02 : f32
    %1 = vector.broadcast %cst : f32 to vector<4x128xf32>
    %2 = arith.subf %0, %1 : vector<4x128xf32>
    %c0_1 = arith.constant 0 : index
    %c0_2 = arith.constant 0 : index
    %3 = vector.load %arg5[%c0_1, %c0_2] : memref<128x128xf32, #tpu.memory_space<vmem>>, vector<128x128xf32>
    %cst_3 = arith.constant dense<0.000000e+00> : vector<4x128xf32>
    %4 = tpu.matmul %2, %3, %cst_3 {dimension_numbers = #tpu.dot_dimension_numbers<[1], [0], [0], [1], [0, 0, 1, 1], [], []>} : vector<4x128xf32>, vector<128x128xf32>, vector<4x128xf32> -> vector<4x128xf32>
    %5 = tpu.iota {dimensions = array<i32: 1>} : vector<4x128xi32>
    %c64_i32 = arith.constant 64 : i32
    %6 = vector.broadcast %c64_i32 : i32 to vector<4x128xi32>
    %7 = arith.cmpi sge, %5, %6 : vector<4x128xi32>
    %8 = arith.extui %7 : vector<4x128xi1> to vector<4x128xi32>
    %9 = arith.sitofp %8 : vector<4x128xi32> to vector<4x128xf32>
    %c0_4 = arith.constant 0 : index
    %c0_5 = arith.constant 0 : index
    %10 = vector.load %arg3[%c0_4, %c0_5] : memref<4x2xf32, #tpu.memory_space<vmem>>, vector<4x2xf32>
    %11 = vector.extract_strided_slice %10 {offsets = [0, 0], sizes = [4, 1], strides = [1, 1]} : vector<4x2xf32> to vector<4x1xf32>
    %cst_6 = arith.constant 1.000000e+00 : f32
    %12 = vector.broadcast %cst_6 : f32 to vector<4x128xf32>
    %13 = arith.subf %12, %9 : vector<4x128xf32>
    %14 = vector.broadcast %11 : vector<4x1xf32> to vector<4x128xf32>
    %15 = arith.mulf %14, %13 : vector<4x128xf32>
    %16 = vector.extract_strided_slice %10 {offsets = [0, 1], sizes = [4, 1], strides = [1, 1]} : vector<4x2xf32> to vector<4x1xf32>
    %17 = vector.broadcast %16 : vector<4x1xf32> to vector<4x128xf32>
    %18 = arith.mulf %17, %9 : vector<4x128xf32>
    %19 = arith.addf %15, %18 : vector<4x128xf32>
    %c0_7 = arith.constant 0 : index
    %c0_8 = arith.constant 0 : index
    %20 = vector.load %arg2[%c0_7, %c0_8] : memref<4x128xf32, #tpu.memory_space<vmem>>, vector<4x128xf32>
    %21 = arith.mulf %19, %20 : vector<4x128xf32>
    %c0_9 = arith.constant 0 : index
    %c0_10 = arith.constant 0 : index
    %22 = vector.load %arg4[%c0_9, %c0_10] : memref<1x128xf32, #tpu.memory_space<vmem>>, vector<1x128xf32>
    %23 = vector.broadcast %22 : vector<1x128xf32> to vector<4x128xf32>
    %24 = arith.mulf %21, %23 : vector<4x128xf32>
    %25 = arith.addf %4, %24 : vector<4x128xf32>
    %c0_11 = arith.constant 0 : index
    %c0_12 = arith.constant 0 : index
    %26 = vector.load %arg6[%c0_11, %c0_12] : memref<128x128xf32, #tpu.memory_space<vmem>>, vector<128x128xf32>
    %cst_13 = arith.constant dense<0.000000e+00> : vector<4x128xf32>
    %27 = tpu.matmul %25, %26, %cst_13 {dimension_numbers = #tpu.dot_dimension_numbers<[1], [0], [0], [1], [0, 0, 1, 1], [], []>} : vector<4x128xf32>, vector<128x128xf32>, vector<4x128xf32> -> vector<4x128xf32>
    %cst_14 = arith.constant 1.280000e+02 : f32
    %28 = vector.broadcast %cst_14 : f32 to vector<4x128xf32>
    %29 = arith.addf %27, %28 : vector<4x128xf32>
    %c0_15 = arith.constant 0 : index
    %c0_16 = arith.constant 0 : index
    %30 = vector.load %arg7[%c0_15, %c0_16] : memref<4x128xf32, #tpu.memory_space<vmem>>, vector<4x128xf32>
    tpu.vector_store %arg7[%c0_15, %c0_16], %29 {strides = array<i32>} : memref<4x128xf32, #tpu.memory_space<vmem>>, vector<4x128xf32>,
    return
  }
  func.func @transform_0(%arg0: i32) -> (i32, i32) {
    %c0_i32 = arith.constant 0 : i32
    %c0_i32_0 = arith.constant 0 : i32
    return %arg0, %c0_i32 : i32, i32
  }
  func.func @transform_1(%arg0: i32) -> (i32, i32) {
    %c0_i32 = arith.constant 0 : i32
    %c0_i32_0 = arith.constant 0 : i32
    return %arg0, %c0_i32 : i32, i32
  }
  func.func @transform_2(%arg0: i32) -> (i32, i32) {
    %c0_i32 = arith.constant 0 : i32
    %c0_i32_0 = arith.constant 0 : i32
    return %arg0, %c0_i32 : i32, i32
  }
  func.func @transform_3(%arg0: i32) -> (i32, i32) {
    %c0_i32 = arith.constant 0 : i32
    %c0_i32_0 = arith.constant 0 : i32
    %c0_i32_1 = arith.constant 0 : i32
    return %c0_i32, %c0_i32_0 : i32, i32
  }
  func.func @transform_4(%arg0: i32) -> (i32, i32) {
    %c0_i32 = arith.constant 0 : i32
    %c0_i32_0 = arith.constant 0 : i32
    %c0_i32_1 = arith.constant 0 : i32
    return %c0_i32, %c0_i32_0 : i32, i32
  }
  func.func @transform_5(%arg0: i32) -> (i32, i32) {
    %c0_i32 = arith.constant 0 : i32
    %c0_i32_0 = arith.constant 0 : i32
    %c0_i32_1 = arith.constant 0 : i32
    return %c0_i32, %c0_i32_0 : i32, i32
  }
  func.func @transform_6(%arg0: i32) -> (i32, i32) {
    %c0_i32 = arith.constant 0 : i32
    %c0_i32_0 = arith.constant 0 : i32
    return %arg0, %c0_i32 : i32, i32
  }
}

module attributes {stable_mosaic.version = 11 : i64} {
  func.func @_rgb2ycbcr_kernel(%arg0: i32, %arg1: i32, %arg2: memref<1x3x2x128xf32, #tpu.memory_space<vmem>>, %arg3: memref<1x2x128xf32, #tpu.memory_space<vmem>>, %arg4: memref<1x2x128xf32, #tpu.memory_space<vmem>>, %arg5: memref<1x2x128xf32, #tpu.memory_space<vmem>>) attributes {dimension_semantics = [#tpu.dimension_semantics<parallel>, #tpu.dimension_semantics<parallel>], iteration_bounds = array<i64: 2, 1>, scalar_prefetch = 0 : i64, scratch_operands = 0 : i64, tpu.core_type = #tpu.core_type<tc>, window_params = [{transform_indices = @transform_0, window_bounds = array<i64: 1, 3, 2, 128>}, {transform_indices = @transform_1, window_bounds = array<i64: 1, 2, 128>}, {transform_indices = @transform_2, window_bounds = array<i64: 1, 2, 128>}, {transform_indices = @transform_3, window_bounds = array<i64: 1, 2, 128>}]} {
    %c0 = arith.constant 0 : index
    %c0_0 = arith.constant 0 : index
    %c0_1 = arith.constant 0 : index
    %c0_2 = arith.constant 0 : index
    %0 = vector.load %arg2[%c0, %c0_0, %c0_1, %c0_2] : memref<1x3x2x128xf32, #tpu.memory_space<vmem>>, vector<1x1x2x128xf32>
    %1 = vector.shape_cast %0 : vector<1x1x2x128xf32> to vector<2x128xf32>
    %c0_3 = arith.constant 0 : index
    %c1 = arith.constant 1 : index
    %c0_4 = arith.constant 0 : index
    %c0_5 = arith.constant 0 : index
    %2 = vector.load %arg2[%c0_3, %c1, %c0_4, %c0_5] : memref<1x3x2x128xf32, #tpu.memory_space<vmem>>, vector<1x1x2x128xf32>
    %3 = vector.shape_cast %2 : vector<1x1x2x128xf32> to vector<2x128xf32>
    %c0_6 = arith.constant 0 : index
    %c2 = arith.constant 2 : index
    %c0_7 = arith.constant 0 : index
    %c0_8 = arith.constant 0 : index
    %4 = vector.load %arg2[%c0_6, %c2, %c0_7, %c0_8] : memref<1x3x2x128xf32, #tpu.memory_space<vmem>>, vector<1x1x2x128xf32>
    %5 = vector.shape_cast %4 : vector<1x1x2x128xf32> to vector<2x128xf32>
    %cst = arith.constant 2.990000e-01 : f32
    %6 = vector.broadcast %cst : f32 to vector<2x128xf32>
    %7 = arith.mulf %6, %1 : vector<2x128xf32>
    %cst_9 = arith.constant 5.870000e-01 : f32
    %8 = vector.broadcast %cst_9 : f32 to vector<2x128xf32>
    %9 = arith.mulf %8, %3 : vector<2x128xf32>
    %10 = arith.addf %7, %9 : vector<2x128xf32>
    %cst_10 = arith.constant 1.140000e-01 : f32
    %11 = vector.broadcast %cst_10 : f32 to vector<2x128xf32>
    %12 = arith.mulf %11, %5 : vector<2x128xf32>
    %13 = arith.addf %10, %12 : vector<2x128xf32>
    %c0_11 = arith.constant 0 : index
    %c0_12 = arith.constant 0 : index
    %c0_13 = arith.constant 0 : index
    %14 = vector.load %arg3[%c0_11, %c0_12, %c0_13] : memref<1x2x128xf32, #tpu.memory_space<vmem>>, vector<1x2x128xf32>
    %15 = vector.shape_cast %14 : vector<1x2x128xf32> to vector<2x128xf32>
    %16 = vector.shape_cast %13 : vector<2x128xf32> to vector<1x2x128xf32>
    tpu.vector_store %arg3[%c0_11, %c0_12, %c0_13], %16 {strides = array<i32>} : memref<1x2x128xf32, #tpu.memory_space<vmem>>, vector<1x2x128xf32>,
    %cst_14 = arith.constant -1.687360e-01 : f32
    %17 = vector.broadcast %cst_14 : f32 to vector<2x128xf32>
    %18 = arith.mulf %17, %1 : vector<2x128xf32>
    %cst_15 = arith.constant 3.312640e-01 : f32
    %19 = vector.broadcast %cst_15 : f32 to vector<2x128xf32>
    %20 = arith.mulf %19, %3 : vector<2x128xf32>
    %21 = arith.subf %18, %20 : vector<2x128xf32>
    %cst_16 = arith.constant 5.000000e-01 : f32
    %22 = vector.broadcast %cst_16 : f32 to vector<2x128xf32>
    %23 = arith.mulf %22, %5 : vector<2x128xf32>
    %24 = arith.addf %21, %23 : vector<2x128xf32>
    %cst_17 = arith.constant 1.280000e+02 : f32
    %25 = vector.broadcast %cst_17 : f32 to vector<2x128xf32>
    %26 = arith.addf %24, %25 : vector<2x128xf32>
    %c0_18 = arith.constant 0 : index
    %c0_19 = arith.constant 0 : index
    %c0_20 = arith.constant 0 : index
    %27 = vector.load %arg4[%c0_18, %c0_19, %c0_20] : memref<1x2x128xf32, #tpu.memory_space<vmem>>, vector<1x2x128xf32>
    %28 = vector.shape_cast %27 : vector<1x2x128xf32> to vector<2x128xf32>
    %29 = vector.shape_cast %26 : vector<2x128xf32> to vector<1x2x128xf32>
    tpu.vector_store %arg4[%c0_18, %c0_19, %c0_20], %29 {strides = array<i32>} : memref<1x2x128xf32, #tpu.memory_space<vmem>>, vector<1x2x128xf32>,
    %cst_21 = arith.constant 5.000000e-01 : f32
    %30 = vector.broadcast %cst_21 : f32 to vector<2x128xf32>
    %31 = arith.mulf %30, %1 : vector<2x128xf32>
    %cst_22 = arith.constant 4.186880e-01 : f32
    %32 = vector.broadcast %cst_22 : f32 to vector<2x128xf32>
    %33 = arith.mulf %32, %3 : vector<2x128xf32>
    %34 = arith.subf %31, %33 : vector<2x128xf32>
    %cst_23 = arith.constant 8.131200e-02 : f32
    %35 = vector.broadcast %cst_23 : f32 to vector<2x128xf32>
    %36 = arith.mulf %35, %5 : vector<2x128xf32>
    %37 = arith.subf %34, %36 : vector<2x128xf32>
    %cst_24 = arith.constant 1.280000e+02 : f32
    %38 = vector.broadcast %cst_24 : f32 to vector<2x128xf32>
    %39 = arith.addf %37, %38 : vector<2x128xf32>
    %c0_25 = arith.constant 0 : index
    %c0_26 = arith.constant 0 : index
    %c0_27 = arith.constant 0 : index
    %40 = vector.load %arg5[%c0_25, %c0_26, %c0_27] : memref<1x2x128xf32, #tpu.memory_space<vmem>>, vector<1x2x128xf32>
    %41 = vector.shape_cast %40 : vector<1x2x128xf32> to vector<2x128xf32>
    %42 = vector.shape_cast %39 : vector<2x128xf32> to vector<1x2x128xf32>
    tpu.vector_store %arg5[%c0_25, %c0_26, %c0_27], %42 {strides = array<i32>} : memref<1x2x128xf32, #tpu.memory_space<vmem>>, vector<1x2x128xf32>,
    return
  }
  func.func @transform_0(%arg0: i32, %arg1: i32) -> (i32, i32, i32, i32) {
    %c0_i32 = arith.constant 0 : i32
    %c0_i32_0 = arith.constant 0 : i32
    %c0_i32_1 = arith.constant 0 : i32
    return %arg0, %c0_i32, %arg1, %c0_i32_0 : i32, i32, i32, i32
  }
  func.func @transform_1(%arg0: i32, %arg1: i32) -> (i32, i32, i32) {
    %c0_i32 = arith.constant 0 : i32
    %c0_i32_0 = arith.constant 0 : i32
    return %arg0, %arg1, %c0_i32 : i32, i32, i32
  }
  func.func @transform_2(%arg0: i32, %arg1: i32) -> (i32, i32, i32) {
    %c0_i32 = arith.constant 0 : i32
    %c0_i32_0 = arith.constant 0 : i32
    return %arg0, %arg1, %c0_i32 : i32, i32, i32
  }
  func.func @transform_3(%arg0: i32, %arg1: i32) -> (i32, i32, i32) {
    %c0_i32 = arith.constant 0 : i32
    %c0_i32_0 = arith.constant 0 : i32
    return %arg0, %arg1, %c0_i32 : i32, i32, i32
  }
}

module attributes {stable_mosaic.version = 11 : i64} {
  func.func @_jpeg_block_kernel(%arg0: i32, %arg1: memref<1x128xf32, #tpu.memory_space<vmem>>, %arg2: memref<1x128xf32, #tpu.memory_space<vmem>>, %arg3: memref<1x2xf32, #tpu.memory_space<vmem>>, %arg4: memref<1x128xf32, #tpu.memory_space<vmem>>, %arg5: memref<128x128xf32, #tpu.memory_space<vmem>>, %arg6: memref<128x128xf32, #tpu.memory_space<vmem>>, %arg7: memref<1x128xf32, #tpu.memory_space<vmem>>) attributes {dimension_semantics = [#tpu.dimension_semantics<parallel>], iteration_bounds = array<i64: 1>, scalar_prefetch = 0 : i64, scratch_operands = 0 : i64, tpu.core_type = #tpu.core_type<tc>, window_params = [{transform_indices = @transform_0, window_bounds = array<i64: 1, 128>}, {transform_indices = @transform_1, window_bounds = array<i64: 1, 128>}, {transform_indices = @transform_2, window_bounds = array<i64: 1, 2>}, {pipeline_mode = #tpu.pipeline_mode<synchronous>, transform_indices = @transform_3, window_bounds = array<i64: 1, 128>}, {pipeline_mode = #tpu.pipeline_mode<synchronous>, transform_indices = @transform_4, window_bounds = array<i64: 128, 128>}, {pipeline_mode = #tpu.pipeline_mode<synchronous>, transform_indices = @transform_5, window_bounds = array<i64: 128, 128>}, {transform_indices = @transform_6, window_bounds = array<i64: 1, 128>}]} {
    %c0 = arith.constant 0 : index
    %c0_0 = arith.constant 0 : index
    %0 = vector.load %arg1[%c0, %c0_0] : memref<1x128xf32, #tpu.memory_space<vmem>>, vector<1x128xf32>
    %cst = arith.constant 1.280000e+02 : f32
    %1 = vector.broadcast %cst : f32 to vector<1x128xf32>
    %2 = arith.subf %0, %1 : vector<1x128xf32>
    %c0_1 = arith.constant 0 : index
    %c0_2 = arith.constant 0 : index
    %3 = vector.load %arg5[%c0_1, %c0_2] : memref<128x128xf32, #tpu.memory_space<vmem>>, vector<128x128xf32>
    %cst_3 = arith.constant dense<0.000000e+00> : vector<1x128xf32>
    %4 = tpu.matmul %2, %3, %cst_3 {dimension_numbers = #tpu.dot_dimension_numbers<[1], [0], [0], [1], [0, 0, 1, 1], [], []>} : vector<1x128xf32>, vector<128x128xf32>, vector<1x128xf32> -> vector<1x128xf32>
    %5 = tpu.iota {dimensions = array<i32: 1>} : vector<1x128xi32>
    %c64_i32 = arith.constant 64 : i32
    %6 = vector.broadcast %c64_i32 : i32 to vector<1x128xi32>
    %7 = arith.cmpi sge, %5, %6 : vector<1x128xi32>
    %8 = arith.extui %7 : vector<1x128xi1> to vector<1x128xi32>
    %9 = arith.sitofp %8 : vector<1x128xi32> to vector<1x128xf32>
    %c0_4 = arith.constant 0 : index
    %c0_5 = arith.constant 0 : index
    %10 = vector.load %arg3[%c0_4, %c0_5] : memref<1x2xf32, #tpu.memory_space<vmem>>, vector<1x2xf32>
    %11 = vector.extract_strided_slice %10 {offsets = [0, 0], sizes = [1, 1], strides = [1, 1]} : vector<1x2xf32> to vector<1x1xf32>
    %cst_6 = arith.constant 1.000000e+00 : f32
    %12 = vector.broadcast %cst_6 : f32 to vector<1x128xf32>
    %13 = arith.subf %12, %9 : vector<1x128xf32>
    %14 = vector.broadcast %11 : vector<1x1xf32> to vector<1x128xf32>
    %15 = arith.mulf %14, %13 : vector<1x128xf32>
    %16 = vector.extract_strided_slice %10 {offsets = [0, 1], sizes = [1, 1], strides = [1, 1]} : vector<1x2xf32> to vector<1x1xf32>
    %17 = vector.broadcast %16 : vector<1x1xf32> to vector<1x128xf32>
    %18 = arith.mulf %17, %9 : vector<1x128xf32>
    %19 = arith.addf %15, %18 : vector<1x128xf32>
    %c0_7 = arith.constant 0 : index
    %c0_8 = arith.constant 0 : index
    %20 = vector.load %arg2[%c0_7, %c0_8] : memref<1x128xf32, #tpu.memory_space<vmem>>, vector<1x128xf32>
    %21 = arith.mulf %19, %20 : vector<1x128xf32>
    %c0_9 = arith.constant 0 : index
    %c0_10 = arith.constant 0 : index
    %22 = vector.load %arg4[%c0_9, %c0_10] : memref<1x128xf32, #tpu.memory_space<vmem>>, vector<1x128xf32>
    %23 = arith.mulf %21, %22 : vector<1x128xf32>
    %24 = arith.addf %4, %23 : vector<1x128xf32>
    %c0_11 = arith.constant 0 : index
    %c0_12 = arith.constant 0 : index
    %25 = vector.load %arg6[%c0_11, %c0_12] : memref<128x128xf32, #tpu.memory_space<vmem>>, vector<128x128xf32>
    %cst_13 = arith.constant dense<0.000000e+00> : vector<1x128xf32>
    %26 = tpu.matmul %24, %25, %cst_13 {dimension_numbers = #tpu.dot_dimension_numbers<[1], [0], [0], [1], [0, 0, 1, 1], [], []>} : vector<1x128xf32>, vector<128x128xf32>, vector<1x128xf32> -> vector<1x128xf32>
    %cst_14 = arith.constant 1.280000e+02 : f32
    %27 = vector.broadcast %cst_14 : f32 to vector<1x128xf32>
    %28 = arith.addf %26, %27 : vector<1x128xf32>
    %c0_15 = arith.constant 0 : index
    %c0_16 = arith.constant 0 : index
    %29 = vector.load %arg7[%c0_15, %c0_16] : memref<1x128xf32, #tpu.memory_space<vmem>>, vector<1x128xf32>
    tpu.vector_store %arg7[%c0_15, %c0_16], %28 {strides = array<i32>} : memref<1x128xf32, #tpu.memory_space<vmem>>, vector<1x128xf32>,
    return
  }
  func.func @transform_0(%arg0: i32) -> (i32, i32) {
    %c0_i32 = arith.constant 0 : i32
    %c0_i32_0 = arith.constant 0 : i32
    return %arg0, %c0_i32 : i32, i32
  }
  func.func @transform_1(%arg0: i32) -> (i32, i32) {
    %c0_i32 = arith.constant 0 : i32
    %c0_i32_0 = arith.constant 0 : i32
    return %arg0, %c0_i32 : i32, i32
  }
  func.func @transform_2(%arg0: i32) -> (i32, i32) {
    %c0_i32 = arith.constant 0 : i32
    %c0_i32_0 = arith.constant 0 : i32
    return %arg0, %c0_i32 : i32, i32
  }
  func.func @transform_3(%arg0: i32) -> (i32, i32) {
    %c0_i32 = arith.constant 0 : i32
    %c0_i32_0 = arith.constant 0 : i32
    %c0_i32_1 = arith.constant 0 : i32
    return %c0_i32, %c0_i32_0 : i32, i32
  }
  func.func @transform_4(%arg0: i32) -> (i32, i32) {
    %c0_i32 = arith.constant 0 : i32
    %c0_i32_0 = arith.constant 0 : i32
    %c0_i32_1 = arith.constant 0 : i32
    return %c0_i32, %c0_i32_0 : i32, i32
  }
  func.func @transform_5(%arg0: i32) -> (i32, i32) {
    %c0_i32 = arith.constant 0 : i32
    %c0_i32_0 = arith.constant 0 : i32
    %c0_i32_1 = arith.constant 0 : i32
    return %c0_i32, %c0_i32_0 : i32, i32
  }
  func.func @transform_6(%arg0: i32) -> (i32, i32) {
    %c0_i32 = arith.constant 0 : i32
    %c0_i32_0 = arith.constant 0 : i32
    return %arg0, %c0_i32 : i32, i32
  }
}

module attributes {stable_mosaic.version = 11 : i64} {
  func.func @_ycbcr2rgb_kernel(%arg0: i32, %arg1: i32, %arg2: memref<1x2x128xf32, #tpu.memory_space<vmem>>, %arg3: memref<1x2x128xf32, #tpu.memory_space<vmem>>, %arg4: memref<1x2x128xf32, #tpu.memory_space<vmem>>, %arg5: memref<1x3x2x128xf32, #tpu.memory_space<vmem>>) attributes {dimension_semantics = [#tpu.dimension_semantics<parallel>, #tpu.dimension_semantics<parallel>], iteration_bounds = array<i64: 2, 1>, scalar_prefetch = 0 : i64, scratch_operands = 0 : i64, tpu.core_type = #tpu.core_type<tc>, window_params = [{transform_indices = @transform_0, window_bounds = array<i64: 1, 2, 128>}, {transform_indices = @transform_1, window_bounds = array<i64: 1, 2, 128>}, {transform_indices = @transform_2, window_bounds = array<i64: 1, 2, 128>}, {transform_indices = @transform_3, window_bounds = array<i64: 1, 3, 2, 128>}]} {
    %c0 = arith.constant 0 : index
    %c0_0 = arith.constant 0 : index
    %c0_1 = arith.constant 0 : index
    %0 = vector.load %arg2[%c0, %c0_0, %c0_1] : memref<1x2x128xf32, #tpu.memory_space<vmem>>, vector<1x2x128xf32>
    %1 = vector.shape_cast %0 : vector<1x2x128xf32> to vector<2x128xf32>
    %c0_2 = arith.constant 0 : index
    %c0_3 = arith.constant 0 : index
    %c0_4 = arith.constant 0 : index
    %2 = vector.load %arg3[%c0_2, %c0_3, %c0_4] : memref<1x2x128xf32, #tpu.memory_space<vmem>>, vector<1x2x128xf32>
    %3 = vector.shape_cast %2 : vector<1x2x128xf32> to vector<2x128xf32>
    %cst = arith.constant 1.280000e+02 : f32
    %4 = vector.broadcast %cst : f32 to vector<2x128xf32>
    %5 = arith.subf %3, %4 : vector<2x128xf32>
    %c0_5 = arith.constant 0 : index
    %c0_6 = arith.constant 0 : index
    %c0_7 = arith.constant 0 : index
    %6 = vector.load %arg4[%c0_5, %c0_6, %c0_7] : memref<1x2x128xf32, #tpu.memory_space<vmem>>, vector<1x2x128xf32>
    %7 = vector.shape_cast %6 : vector<1x2x128xf32> to vector<2x128xf32>
    %cst_8 = arith.constant 1.280000e+02 : f32
    %8 = vector.broadcast %cst_8 : f32 to vector<2x128xf32>
    %9 = arith.subf %7, %8 : vector<2x128xf32>
    %cst_9 = arith.constant 1.402000e+00 : f32
    %10 = vector.broadcast %cst_9 : f32 to vector<2x128xf32>
    %11 = arith.mulf %10, %9 : vector<2x128xf32>
    %12 = arith.addf %1, %11 : vector<2x128xf32>
    %cst_10 = arith.constant 0.000000e+00 : f32
    %cst_11 = arith.constant 2.550000e+02 : f32
    %13 = vector.broadcast %cst_10 : f32 to vector<2x128xf32>
    %14 = arith.maximumf %13, %12 : vector<2x128xf32>
    %15 = vector.broadcast %cst_11 : f32 to vector<2x128xf32>
    %16 = arith.minimumf %15, %14 : vector<2x128xf32>
    %c0_12 = arith.constant 0 : index
    %c0_13 = arith.constant 0 : index
    %c0_14 = arith.constant 0 : index
    %c0_15 = arith.constant 0 : index
    %17 = vector.load %arg5[%c0_12, %c0_13, %c0_14, %c0_15] : memref<1x3x2x128xf32, #tpu.memory_space<vmem>>, vector<1x1x2x128xf32>
    %18 = vector.shape_cast %17 : vector<1x1x2x128xf32> to vector<2x128xf32>
    %19 = vector.shape_cast %16 : vector<2x128xf32> to vector<1x1x2x128xf32>
    tpu.vector_store %arg5[%c0_12, %c0_13, %c0_14, %c0_15], %19 {strides = array<i32>} : memref<1x3x2x128xf32, #tpu.memory_space<vmem>>, vector<1x1x2x128xf32>,
    %cst_16 = arith.constant 3.441360e-01 : f32
    %20 = vector.broadcast %cst_16 : f32 to vector<2x128xf32>
    %21 = arith.mulf %20, %5 : vector<2x128xf32>
    %22 = arith.subf %1, %21 : vector<2x128xf32>
    %cst_17 = arith.constant 7.141360e-01 : f32
    %23 = vector.broadcast %cst_17 : f32 to vector<2x128xf32>
    %24 = arith.mulf %23, %9 : vector<2x128xf32>
    %25 = arith.subf %22, %24 : vector<2x128xf32>
    %cst_18 = arith.constant 0.000000e+00 : f32
    %cst_19 = arith.constant 2.550000e+02 : f32
    %26 = vector.broadcast %cst_18 : f32 to vector<2x128xf32>
    %27 = arith.maximumf %26, %25 : vector<2x128xf32>
    %28 = vector.broadcast %cst_19 : f32 to vector<2x128xf32>
    %29 = arith.minimumf %28, %27 : vector<2x128xf32>
    %c0_20 = arith.constant 0 : index
    %c1 = arith.constant 1 : index
    %c0_21 = arith.constant 0 : index
    %c0_22 = arith.constant 0 : index
    %30 = vector.load %arg5[%c0_20, %c1, %c0_21, %c0_22] : memref<1x3x2x128xf32, #tpu.memory_space<vmem>>, vector<1x1x2x128xf32>
    %31 = vector.shape_cast %30 : vector<1x1x2x128xf32> to vector<2x128xf32>
    %32 = vector.shape_cast %29 : vector<2x128xf32> to vector<1x1x2x128xf32>
    tpu.vector_store %arg5[%c0_20, %c1, %c0_21, %c0_22], %32 {strides = array<i32>} : memref<1x3x2x128xf32, #tpu.memory_space<vmem>>, vector<1x1x2x128xf32>,
    %cst_23 = arith.constant 1.772000e+00 : f32
    %33 = vector.broadcast %cst_23 : f32 to vector<2x128xf32>
    %34 = arith.mulf %33, %5 : vector<2x128xf32>
    %35 = arith.addf %1, %34 : vector<2x128xf32>
    %cst_24 = arith.constant 0.000000e+00 : f32
    %cst_25 = arith.constant 2.550000e+02 : f32
    %36 = vector.broadcast %cst_24 : f32 to vector<2x128xf32>
    %37 = arith.maximumf %36, %35 : vector<2x128xf32>
    %38 = vector.broadcast %cst_25 : f32 to vector<2x128xf32>
    %39 = arith.minimumf %38, %37 : vector<2x128xf32>
    %c0_26 = arith.constant 0 : index
    %c2 = arith.constant 2 : index
    %c0_27 = arith.constant 0 : index
    %c0_28 = arith.constant 0 : index
    %40 = vector.load %arg5[%c0_26, %c2, %c0_27, %c0_28] : memref<1x3x2x128xf32, #tpu.memory_space<vmem>>, vector<1x1x2x128xf32>
    %41 = vector.shape_cast %40 : vector<1x1x2x128xf32> to vector<2x128xf32>
    %42 = vector.shape_cast %39 : vector<2x128xf32> to vector<1x1x2x128xf32>
    tpu.vector_store %arg5[%c0_26, %c2, %c0_27, %c0_28], %42 {strides = array<i32>} : memref<1x3x2x128xf32, #tpu.memory_space<vmem>>, vector<1x1x2x128xf32>,
    return
  }
  func.func @transform_0(%arg0: i32, %arg1: i32) -> (i32, i32, i32) {
    %c0_i32 = arith.constant 0 : i32
    %c0_i32_0 = arith.constant 0 : i32
    return %arg0, %arg1, %c0_i32 : i32, i32, i32
  }
  func.func @transform_1(%arg0: i32, %arg1: i32) -> (i32, i32, i32) {
    %c0_i32 = arith.constant 0 : i32
    %c0_i32_0 = arith.constant 0 : i32
    return %arg0, %arg1, %c0_i32 : i32, i32, i32
  }
  func.func @transform_2(%arg0: i32, %arg1: i32) -> (i32, i32, i32) {
    %c0_i32 = arith.constant 0 : i32
    %c0_i32_0 = arith.constant 0 : i32
    return %arg0, %arg1, %c0_i32 : i32, i32, i32
  }
  func.func @transform_3(%arg0: i32, %arg1: i32) -> (i32, i32, i32, i32) {
    %c0_i32 = arith.constant 0 : i32
    %c0_i32_0 = arith.constant 0 : i32
    %c0_i32_1 = arith.constant 0 : i32
    return %arg0, %c0_i32, %arg1, %c0_i32_0 : i32, i32, i32, i32
  }
}

</mosaic_0001>

<bundles_post_ra>
// kernel: jpeg_pallas.5
= control target key start
LH: loop header
LB: loop body
LE: loop exit
PB: predicated region body
PF: predicated region fallthrough
CT: control target
= control target key end

     0   :  { %s503_s12 = smov 0   ;;  %s505_s13 = smov 0   ;;  %s542_s0 = inlined_call_operand.vmem [shape: f32[2,3,2,128], index: 0, kind: input, shape index: {}]   ;;  %s543_s1 = inlined_call_operand.vmem [shape: f32[2,2,128], index: 1, kind: output, shape index: {0}]   ;;  %s544_s2 = inlined_call_operand.vmem [shape: f32[2,2,128], index: 2, kind: output, shape index: {1}]   ;;  %s545_s3 = inlined_call_operand.vmem [shape: f32[2,2,128], index: 3, kind: output, shape index: {2}]  }
   0x1   :  { %s507_s14 = smov 0  }
   0x2 LB: > { %s26_s15 = sadd.s32 1, %s477_s13  ;;  %p425_p0 = scmp.ge.s32.totalorder %s481_s14, 1  ;;  %s481_s14 = sphi %s507_s14, %s14_s14   ;;  %s477_s13 = sphi %s505_s13, %s547_s13   ;;  %s473_s12 = sphi %s503_s12, %s546_s12  }
   0x3   : > { %p28_p1 = scmp.ge.s32.totalorder %s26_s15, 2  ;;  %p165_p2 = scmp.lt.s32.totalorder %s481_s14, 3 }
   0x5   : > { %s549_s15 = smov (%p28_p1, %s26_s15), 0  ;;  %p166_p3 = pnand %p425_p0, %p165_p2 }
   0x6   : > { %p208_p4 = scmp.lt.s32.totalorder (!%p166_p3), %s473_s12, 1 }
   0x7   : > { %169 = sbr.rel (%p166_p3) target bundleno = 28 (0x1c), region = 24 }
   0xc   : > { %s551_s12 = smov (!%p208_p4, %s473_s12), 1 }
   0xd   : > { %s434_s16 = smul.u32 6, %s551_s12  ;;  %s427_s20 = sshll.u32 %s551_s12, 1 }
   0xe   : > { %s222_s23 = scalar_lea.vmem %s543_s1, %s427_s20  ;;  %s229_s26 = scalar_lea.vmem %s544_s2, %s427_s20 }
   0xf   : > { %s215_s19 = scalar_lea.vmem %s542_s0, %s434_s16  ;;  %s236_s29 = scalar_lea.vmem %s545_s3, %s427_s20 }
  0x10   : > { %v237_v0 = vld [vmem:[%s215_s19] sm:$0x3]  ;;  %v430_v1 = vld [vmem:[%s215_s19 + $0x2] sm:$0x3]  ;;  %v431_v2 = vld [vmem:[%s215_s19 + $0x4] sm:$0x3] }
  0x11   : > { %v242_v3 = vmul.f32 0.299, %v237_v0  ;;  %v243_v4 = vmul.f32 0.587, %v430_v1  ;;  %v245_v5 = vmul.f32 0.114, %v431_v2 }
  0x12   : > { %v248_v6 = vmul.f32 -0.168736, %v237_v0  ;;  %v249_v7 = vmul.f32 0.331264, %v430_v1  ;;  %v251_v8 = vmul.f32 0.5, %v431_v2  ;;  %v255_v9 = vmul.f32 0.5, %v237_v0 }
  0x13   : > { %v244_v10 = vadd.f32 %v243_v4, %v242_v3  ;;  %v256_v11 = vmul.f32 0.418688, %v430_v1  ;;  %v258_v12 = vmul.f32 0.081312, %v431_v2 }
  0x14   : > { %v250_v13 = vsub.f32 %v248_v6, %v249_v7 }
  0x15   : > { %v246_v14 = vadd.f32 %v245_v5, %v244_v10  ;;  %v257_v15 = vsub.f32 %v255_v9, %v256_v11 }
  0x16   : > { %v252_v16 = vadd.f32 %v251_v8, %v250_v13 }
  0x17   : > { %247 = vst [vmem:[%s222_s23] sm:$0x3] %v246_v14  ;;  %v259_v17 = vsub.f32 %v257_v15, %v258_v12 }
  0x18   : > { %v253_v18 = vadd.f32 128.0, %v252_v16 }
  0x19   : > { %v260_v19 = vadd.f32 128.0, %v259_v17 }
  0x1a   : > { %254 = vst [vmem:[%s229_s26] sm:$0x3] %v253_v18 }
  0x1b   : > { %261 = vst [vmem:[%s236_s29] sm:$0x3] %v260_v19 }
  0x1c PF: > { %s14_s14 = sadd.s32 1, %s481_s14   ;;  %s546_s12 = smov %s477_s13 }
  0x1d   : > { %p11_p5 = scmp.ge.s32.totalorder %s14_s14, 4   ;;  %s547_s13 = smov %s549_s15 }
  0x1f   :  { %13 = sbr.rel (!%p11_p5) target bundleno = 2 (0x2), region = 80 }

// kernel: jpeg_pallas.6
= control target key start
LH: loop header
LB: loop body
LE: loop exit
PB: predicated region body
PF: predicated region fallthrough
CT: control target
= control target key end

     0   :  { %v136_v2 = vmov 0   ;;  %v137_v12 = vmov 1   ;;  %v41_v36 = vlaneseq  ;;  %v138_v40 = vmov 0.0   ;;  %s285_s4 = inlined_call_operand.vmem [shape: f32[128,128], index: 4, kind: input, shape index: {}]   ;;  %s286_s2 = inlined_call_operand.vmem [shape: f32[4,2], index: 2, kind: input, shape index: {}]   ;;  %s287_s5 = inlined_call_operand.vmem [shape: f32[128,128], index: 5, kind: input, shape index: {}]   ;;  %s288_s3 = inlined_call_operand.vmem [shape: f32[1,128], index: 3, kind: input, shape index: {}]   ;;  %s289_s0 = inlined_call_operand.vmem [shape: f32[4,128], index: 0, kind: input, shape index: {}]   ;;  %s290_s1 = inlined_call_operand.vmem [shape: f32[4,128], index: 1, kind: input, shape index: {}]   ;;  %s291_s6 = inlined_call_operand.vmem [shape: f32[4,128], index: 6, kind: output, shape index: {}]  }
   0x1   :  { %v40_v0 = vld [vmem:[%s285_s4 + $0x78] sm:$0xff]  ;;  %v39_v1 = vld [vmem:[%s285_s4 + $0x70] sm:$0xff]  ;;  %133 = vset.pattern.permute.xlu0 %v136_v2  ;;  %v38_v3 = vld [vmem:[%s285_s4 + $0x68] sm:$0xff] }
   0x2   :  { %67 = vmatpush.msra.mxu0 %v40_v0  ;;  %v46_v4 = vld [vmem:[%s286_s2] sm:$0xf]  ;;  %v36_v6 = vld [vmem:[%s285_s4 + $0x58] sm:$0xff]  ;;  %v101_v8 = vld [vmem:[%s287_s5 + $0x70] sm:$0xff]  ;;  %v42_v38 = vand.u32 127, %v41_v36 }
   0x3   :  { %v37_v5 = vld [vmem:[%s285_s4 + $0x60] sm:$0xff]  ;;  %50 = vperm.xlu0 %133, %v46_v4   ;;  %v102_v7 = vld [vmem:[%s287_s5 + $0x78] sm:$0xff]  ;;  %v35_v9 = vld [vmem:[%s285_s4 + $0x50] sm:$0xff] }
   0x4   :  { %68 = vmatpush.msra.mxu0 %v39_v1  ;;  %103 = vmatpush.msra.mxu1 %v102_v7  ;;  %v34_v10 = vld [vmem:[%s285_s4 + $0x48] sm:$0xff]  ;;  %v33_v11 = vld [vmem:[%s285_s4 + $0x40] sm:$0xff]  ;;  %v32_v13 = vld [vmem:[%s285_s4 + $0x38] sm:$0xff]  ;;  %vm43_vm0 = vcmp.ge.s32.totalorder %v42_v38, 64 }
   0x5   :  { %v31_v14 = vld [vmem:[%s285_s4 + $0x30] sm:$0xff]  ;;  %v30_v15 = vld [vmem:[%s285_s4 + $0x28] sm:$0xff]  ;;  %v29_v16 = vld [vmem:[%s285_s4 + $0x20] sm:$0xff]  ;;  %v129_v41 = vsel %vm43_vm0, 1.0, %v138_v40 }
   0x6   :  { %69 = vmatpush.msra.mxu0 %v38_v3  ;;  %104 = vmatpush.msra.mxu1 %v101_v8  ;;  %v28_v17 = vld [vmem:[%s285_s4 + $0x18] sm:$0xff]  ;;  %v27_v18 = vld [vmem:[%s285_s4 + $0x10] sm:$0xff]  ;;  %v23_v19 = vld [vmem:[%s289_s0] sm:$0xf]  ;;  %v47_v42 = vsub.f32 1.0, %v129_v41 }
   0x7   :  { %v26_v20 = vld [vmem:[%s285_s4 + $0x8] sm:$0xff]  ;;  %v25_v21 = vld [vmem:[%s285_s4] sm:$0xff]  ;;  %v128_v22 = vadd.f32 -128.0, %v23_v19  ;;  %v98_v25 = vld [vmem:[%s287_s5 + $0x58] sm:$0xff] }
   0x8   :  { %70 = vmatpush.msra.mxu0 %v37_v5  ;;  %v100_v23 = vld [vmem:[%s287_s5 + $0x68] sm:$0xff]  ;;  %v99_v24 = vld [vmem:[%s287_s5 + $0x60] sm:$0xff]  ;;  %v97_v26 = vld [vmem:[%s287_s5 + $0x50] sm:$0xff] }
   0x9   :  { %105 = vmatpush.msra.mxu1 %v100_v23  ;;  %v96_v27 = vld [vmem:[%s287_s5 + $0x48] sm:$0xff]  ;;  %v95_v28 = vld [vmem:[%s287_s5 + $0x40] sm:$0xff]  ;;  %v94_v29 = vld [vmem:[%s287_s5 + $0x38] sm:$0xff] }
   0xa   :  { %71 = vmatpush.msra.mxu0 %v36_v6  ;;  %v93_v30 = vld [vmem:[%s287_s5 + $0x30] sm:$0xff]  ;;  %v92_v31 = vld [vmem:[%s287_s5 + $0x28] sm:$0xff]  ;;  %v91_v32 = vld [vmem:[%s287_s5 + $0x20] sm:$0xff] }
   0xb   :  { %134 = vset.pattern.permute.xlu0 %v137_v12  ;;  %106 = vmatpush.msra.mxu1 %v99_v24  ;;  %v90_v33 = vld [vmem:[%s287_s5 + $0x18] sm:$0xff]  ;;  %v89_v34 = vld [vmem:[%s287_s5 + $0x10] sm:$0xff]  ;;  %v88_v35 = vld [vmem:[%s287_s5 + $0x8] sm:$0xff] }
   0xc   :  { %72 = vmatpush.msra.mxu0 %v35_v9  ;;  %55 = vperm.xlu0 %134, %v46_v4   ;;  %v87_v37 = vld [vmem:[%s287_s5] sm:$0xff] }
   0xd   :  { %107 = vmatpush.msra.mxu1 %v98_v25  ;;  %v60_v47 = vld [vmem:[%s290_s1] sm:$0xf] }
   0xe   :  { %73 = vmatpush.msra.mxu0 %v34_v10  ;;  %v135_v49 = vld [vmem:[%s288_s3] ss:$0 sm:$0xff] }
   0xf   :  { %108 = vmatpush.msra.mxu1 %v97_v26 }
  0x10   :  { %74 = vmatpush.msra.mxu0 %v33_v11 }
  0x11   :  { %109 = vmatpush.msra.mxu1 %v96_v27 }
  0x12   :  { %75 = vmatpush.msra.mxu0 %v32_v13 }
  0x13   :  { %110 = vmatpush.msra.mxu1 %v95_v28 }
  0x14   :  { %76 = vmatpush.msra.mxu0 %v31_v14 }
  0x15   :  { %111 = vmatpush.msra.mxu1 %v94_v29 }
  0x16   :  { %77 = vmatpush.msra.mxu0 %v30_v15 }
  0x17   :  { %112 = vmatpush.msra.mxu1 %v93_v30 }
  0x18   :  { %78 = vmatpush.msra.mxu0 %v29_v16 }
  0x19   :  { %113 = vmatpush.msra.mxu1 %v92_v31 }
  0x1a   :  { %79 = vmatpush.msra.mxu0 %v28_v17 }
  0x1b   :  { %114 = vmatpush.msra.mxu1 %v91_v32 }
  0x1c   :  { %80 = vmatpush.msra.mxu0 %v27_v18 }
  0x1d   :  { %115 = vmatpush.msra.mxu1 %v90_v33 }
  0x1e   :  { %81 = vmatpush.msra.mxu0 %v26_v20 }
  0x1f   :  { %116 = vmatpush.msra.mxu1 %v89_v34 }
  0x20   :  { %82 = vmatpush.msra.mxu0 %v25_v21 }
  0x21   :  { %83 = vmatmul.f32.vlgmr.msra.gmra.mxu0 %v128_v22  ;;  %117 = vmatpush.msra.mxu1 %v88_v35 }
  0x23   :  { %118 = vmatpush.msra.mxu1 %v87_v37 }
  0x75   :  { %v51_v39 = vpop.permute.xlu0 %50 }
  0x76   :  { %v53_v44 = vmul.f32 %v51_v39, %v47_v42 }
  0x7e   :  { %v56_v43 = vpop.permute.xlu0 %55 }
  0x7f   :  { %v58_v45 = vmul.f32 %v129_v41, %v56_v43 }
  0x81   :  { %v59_v46 = vadd.f32 %v58_v45, %v53_v44 }
  0x83   :  { %v61_v48 = vmul.f32 %v60_v47, %v59_v46 }
  0x85   :  { %v66_v50 = vmul.f32 %v135_v49, %v61_v48 }
  0x9e   :  { %v84_v51 = vpop.f32.mrf.mxu0 }
  0x9f   :  { %v85_v52 = vadd.f32 %v84_v51, %v66_v50 }
  0xa1   :  { %119 = vmatmul.f32.vlgmr.msra.gmra.mxu1 %v85_v52 }
 0x11e   :  { %v120_v53 = vpop.f32.mrf.mxu1 }
 0x11f   :  { %v121_v54 = vadd.f32 128.0, %v120_v53 }
 0x121   :  { %123 = vst [vmem:[%s291_s6] sm:$0xf] %v121_v54 }

// kernel: jpeg_pallas.9
= control target key start
LH: loop header
LB: loop body
LE: loop exit
PB: predicated region body
PF: predicated region fallthrough
CT: control target
= control target key end

     0   :  { %s473_s12 = smov 0   ;;  %s475_s13 = smov 0   ;;  %s512_s0 = inlined_call_operand.vmem [shape: f32[2,2,128], index: 0, kind: input, shape index: {}]   ;;  %s513_s1 = inlined_call_operand.vmem [shape: f32[2,2,128], index: 1, kind: input, shape index: {}]   ;;  %s514_s2 = inlined_call_operand.vmem [shape: f32[2,2,128], index: 2, kind: input, shape index: {}]   ;;  %s515_s3 = inlined_call_operand.vmem [shape: f32[2,3,2,128], index: 3, kind: output, shape index: {}]  }
   0x1   :  { %s477_s14 = smov 0  }
   0x2 LB: > { %s25_s15 = sadd.s32 1, %s447_s13  ;;  %p393_p0 = scmp.ge.s32.totalorder %s451_s14, 1  ;;  %s451_s14 = sphi %s477_s14, %s13_s14   ;;  %s447_s13 = sphi %s475_s13, %s517_s13   ;;  %s443_s12 = sphi %s473_s12, %s516_s12  }
   0x3   : > { %p27_p1 = scmp.ge.s32.totalorder %s25_s15, 2  ;;  %p183_p2 = scmp.lt.s32.totalorder %s451_s14, 3 }
   0x5   : > { %s519_s15 = smov (%p27_p1, %s25_s15), 0  ;;  %p184_p3 = pnand %p393_p0, %p183_p2 }
   0x6   : > { %p226_p4 = scmp.lt.s32.totalorder (!%p184_p3), %s443_s12, 1 }
   0x7   : > { %187 = sbr.rel (%p184_p3) target bundleno = 29 (0x1d), region = 32 }
   0xc   : > { %s521_s12 = smov (!%p226_p4, %s443_s12), 1 }
   0xd   : > { %s394_s16 = sshll.u32 %s521_s12, 1  ;;  %s404_s26 = smul.u32 6, %s521_s12 }
   0xe   : > { %s232_s19 = scalar_lea.vmem %s512_s0, %s394_s16  ;;  %s239_s22 = scalar_lea.vmem %s513_s1, %s394_s16 }
   0xf   : > { %s246_s25 = scalar_lea.vmem %s514_s2, %s394_s16  ;;  %v256_v0 = vld [vmem:[%s239_s22] sm:$0x3]  ;;  %s254_s29 = scalar_lea.vmem %s515_s3, %s404_s26 }
  0x10   : > { %v258_v1 = vld [vmem:[%s246_s25] sm:$0x3]  ;;  %v398_v2 = vadd.f32 -128.0, %v256_v0 }
  0x11   : > { %v255_v3 = vld [vmem:[%s232_s19] sm:$0x3]  ;;  %v399_v4 = vadd.f32 -128.0, %v258_v1 }
  0x12   : > { %v265_v5 = vmul.f32 0.344136, %v398_v2  ;;  %v273_v6 = vmul.f32 1.772, %v398_v2 }
  0x13   : > { %v260_v7 = vmul.f32 1.402, %v399_v4  ;;  %v267_v8 = vmul.f32 0.714136, %v399_v4 }
  0x14   : > { %v266_v9 = vsub.f32 %v255_v3, %v265_v5  ;;  %v274_v10 = vadd.f32 %v273_v6, %v255_v3 }
  0x15   : > { %v261_v11 = vadd.f32 %v260_v7, %v255_v3 }
  0x16   : > { %v268_v12 = vsub.f32 %v266_v9, %v267_v8  ;;  %v275_v13 = vmax.f32 %v274_v10, 0.0 }
  0x17   : > { %v262_v14 = vmax.f32 %v261_v11, 0.0 }
  0x18   : > { %v269_v15 = vmax.f32 %v268_v12, 0.0  ;;  %v276_v16 = vmin.f32 %v275_v13, 255.0 }
  0x19   : > { %v263_v17 = vmin.f32 %v262_v14, 255.0 }
  0x1a   : > { %v270_v18 = vmin.f32 %v269_v15, 255.0  ;;  %401 = vst [vmem:[%s254_s29 + $0x4] sm:$0x3] %v276_v16 }
  0x1b   : > { %264 = vst [vmem:[%s254_s29] sm:$0x3] %v263_v17 }
  0x1c   : > { %400 = vst [vmem:[%s254_s29 + $0x2] sm:$0x3] %v270_v18 }
  0x1d PF: > { %s13_s14 = sadd.s32 1, %s451_s14   ;;  %s516_s12 = smov %s447_s13 }
  0x1e   : > { %p10_p5 = scmp.ge.s32.totalorder %s13_s14, 4   ;;  %s517_s13 = smov %s519_s15 }
  0x20   :  { %12 = sbr.rel (!%p10_p5) target bundleno = 2 (0x2), region = 70 }

// kernel: jpeg_pallas.7
= control target key start
LH: loop header
LB: loop body
LE: loop exit
PB: predicated region body
PF: predicated region fallthrough
CT: control target
= control target key end

     0   :  { %v134_v2 = vmov 0   ;;  %v135_v10 = vmov 1   ;;  %v41_v36 = vlaneseq  ;;  %v136_v40 = vmov 0.0   ;;  %s283_s4 = inlined_call_operand.vmem [shape: f32[128,128], index: 4, kind: input, shape index: {}]   ;;  %s284_s2 = inlined_call_operand.vmem [shape: f32[1,2], index: 2, kind: input, shape index: {}]   ;;  %s285_s5 = inlined_call_operand.vmem [shape: f32[128,128], index: 5, kind: input, shape index: {}]   ;;  %s286_s0 = inlined_call_operand.vmem [shape: f32[1,128], index: 0, kind: input, shape index: {}]   ;;  %s287_s1 = inlined_call_operand.vmem [shape: f32[1,128], index: 1, kind: input, shape index: {}]   ;;  %s288_s3 = inlined_call_operand.vmem [shape: f32[1,128], index: 3, kind: input, shape index: {}]   ;;  %s289_s6 = inlined_call_operand.vmem [shape: f32[1,128], index: 6, kind: output, shape index: {}]  }
   0x1   :  { %v40_v0 = vld [vmem:[%s283_s4 + $0x78] sm:$0xff]  ;;  %v39_v1 = vld [vmem:[%s283_s4 + $0x70] sm:$0xff]  ;;  %132 = vset.pattern.permute.xlu0 %v134_v2  ;;  %v38_v3 = vld [vmem:[%s283_s4 + $0x68] sm:$0xff] }
   0x2   :  { %66 = vmatpush.msra.mxu0 %v40_v0  ;;  %v46_v4 = vld [vmem:[%s284_s2] sm:$0x1]  ;;  %v36_v6 = vld [vmem:[%s283_s4 + $0x58] sm:$0xff]  ;;  %v35_v8 = vld [vmem:[%s283_s4 + $0x50] sm:$0xff]  ;;  %v42_v39 = vand.u32 127, %v41_v36 }
   0x3   :  { %50 = vperm.xlu0 %132, %v46_v4   ;;  %v37_v5 = vld [vmem:[%s283_s4 + $0x60] sm:$0xff]  ;;  %v101_v7 = vld [vmem:[%s285_s5 + $0x78] sm:$0xff]  ;;  %v34_v9 = vld [vmem:[%s283_s4 + $0x48] sm:$0xff] }
   0x4   :  { %67 = vmatpush.msra.mxu0 %v39_v1  ;;  %102 = vmatpush.msra.mxu1 %v101_v7  ;;  %v33_v11 = vld [vmem:[%s283_s4 + $0x40] sm:$0xff]  ;;  %v32_v12 = vld [vmem:[%s283_s4 + $0x38] sm:$0xff]  ;;  %v31_v13 = vld [vmem:[%s283_s4 + $0x30] sm:$0xff]  ;;  %vm43_vm0 = vcmp.ge.s32.totalorder %v42_v39, 64 }
   0x5   :  { %v30_v14 = vld [vmem:[%s283_s4 + $0x28] sm:$0xff]  ;;  %v29_v15 = vld [vmem:[%s283_s4 + $0x20] sm:$0xff]  ;;  %v28_v16 = vld [vmem:[%s283_s4 + $0x18] sm:$0xff]  ;;  %v128_v41 = vsel %vm43_vm0, 1.0, %v136_v40 }
   0x6   :  { %68 = vmatpush.msra.mxu0 %v38_v3  ;;  %v27_v17 = vld [vmem:[%s283_s4 + $0x10] sm:$0xff]  ;;  %v23_v18 = vld [vmem:[%s286_s0] sm:$0x1]  ;;  %v26_v19 = vld [vmem:[%s283_s4 + $0x8] sm:$0xff]  ;;  %v47_v43 = vsub.f32 1.0, %v128_v41 }
   0x7   :  { %v25_v20 = vld [vmem:[%s283_s4] sm:$0xff]  ;;  %v127_v21 = vadd.f32 -128.0, %v23_v18  ;;  %v100_v22 = vld [vmem:[%s285_s5 + $0x70] sm:$0xff]  ;;  %v99_v23 = vld [vmem:[%s285_s5 + $0x68] sm:$0xff] }
   0x8   :  { %69 = vmatpush.msra.mxu0 %v37_v5  ;;  %103 = vmatpush.msra.mxu1 %v100_v22  ;;  %v98_v24 = vld [vmem:[%s285_s5 + $0x60] sm:$0xff]  ;;  %v97_v25 = vld [vmem:[%s285_s5 + $0x58] sm:$0xff]  ;;  %v96_v26 = vld [vmem:[%s285_s5 + $0x50] sm:$0xff] }
   0x9   :  { %v95_v27 = vld [vmem:[%s285_s5 + $0x48] sm:$0xff]  ;;  %v94_v28 = vld [vmem:[%s285_s5 + $0x40] sm:$0xff]  ;;  %v93_v29 = vld [vmem:[%s285_s5 + $0x38] sm:$0xff] }
   0xa   :  { %70 = vmatpush.msra.mxu0 %v36_v6  ;;  %104 = vmatpush.msra.mxu1 %v99_v23  ;;  %v92_v30 = vld [vmem:[%s285_s5 + $0x30] sm:$0xff]  ;;  %v91_v31 = vld [vmem:[%s285_s5 + $0x28] sm:$0xff]  ;;  %v90_v32 = vld [vmem:[%s285_s5 + $0x20] sm:$0xff] }
   0xb   :  { %133 = vset.pattern.permute.xlu0 %v135_v10  ;;  %v89_v33 = vld [vmem:[%s285_s5 + $0x18] sm:$0xff]  ;;  %v88_v34 = vld [vmem:[%s285_s5 + $0x10] sm:$0xff]  ;;  %v87_v35 = vld [vmem:[%s285_s5 + $0x8] sm:$0xff] }
   0xc   :  { %71 = vmatpush.msra.mxu0 %v35_v8  ;;  %56 = vperm.xlu0 %133, %v46_v4   ;;  %v86_v37 = vld [vmem:[%s285_s5] sm:$0xff] }
   0xd   :  { %105 = vmatpush.msra.mxu1 %v98_v24  ;;  %v62_v49 = vld [vmem:[%s287_s1] sm:$0x1] }
   0xe   :  { %72 = vmatpush.msra.mxu0 %v34_v9  ;;  %v64_v51 = vld [vmem:[%s288_s3] sm:$0x1] }
   0xf   :  { %106 = vmatpush.msra.mxu1 %v97_v25 }
  0x10   :  { %73 = vmatpush.msra.mxu0 %v33_v11 }
  0x11   :  { %107 = vmatpush.msra.mxu1 %v96_v26 }
  0x12   :  { %74 = vmatpush.msra.mxu0 %v32_v12 }
  0x13   :  { %108 = vmatpush.msra.mxu1 %v95_v27 }
  0x14   :  { %75 = vmatpush.msra.mxu0 %v31_v13 }
  0x15   :  { %109 = vmatpush.msra.mxu1 %v94_v28 }
  0x16   :  { %76 = vmatpush.msra.mxu0 %v30_v14 }
  0x17   :  { %110 = vmatpush.msra.mxu1 %v93_v29 }
  0x18   :  { %77 = vmatpush.msra.mxu0 %v29_v15 }
  0x19   :  { %111 = vmatpush.msra.mxu1 %v92_v30 }
  0x1a   :  { %78 = vmatpush.msra.mxu0 %v28_v16 }
  0x1b   :  { %112 = vmatpush.msra.mxu1 %v91_v31 }
  0x1c   :  { %79 = vmatpush.msra.mxu0 %v27_v17 }
  0x1d   :  { %113 = vmatpush.msra.mxu1 %v90_v32 }
  0x1e   :  { %80 = vmatpush.msra.mxu0 %v26_v19 }
  0x1f   :  { %114 = vmatpush.msra.mxu1 %v89_v33 }
  0x20   :  { %81 = vmatpush.msra.mxu0 %v25_v20 }
  0x21   :  { %82 = vmatmul.f32.vlgmr.msra.gmra.mxu0 %v127_v21  ;;  %115 = vmatpush.msra.mxu1 %v88_v34 }
  0x23   :  { %116 = vmatpush.msra.mxu1 %v87_v35 }
  0x25   :  { %117 = vmatpush.msra.mxu1 %v86_v37 }
  0x75   :  { %v51_v38 = vpop.permute.xlu0 %50 }
  0x76   :  { %v53_v44 = vperm.slane %v51_v38, 0 }
  0x78   :  { %v54_v46 = vmul.f32 %v53_v44, %v47_v43 }
  0x7e   :  { %v57_v42 = vpop.permute.xlu0 %56 }
  0x7f   :  { %v59_v45 = vperm.slane %v57_v42, 0 }
  0x81   :  { %v60_v47 = vmul.f32 %v128_v41, %v59_v45 }
  0x83   :  { %v61_v48 = vadd.f32 %v60_v47, %v54_v46 }
  0x85   :  { %v63_v50 = vmul.f32 %v62_v49, %v61_v48 }
  0x87   :  { %v65_v52 = vmul.f32 %v64_v51, %v63_v50 }
  0x9e   :  { %v83_v53 = vpop.f32.mrf.mxu0 }
  0x9f   :  { %v84_v54 = vadd.f32 %v83_v53, %v65_v52 }
  0xa1   :  { %118 = vmatmul.f32.vlgmr.msra.gmra.mxu1 %v84_v54 }
 0x11e   :  { %v119_v55 = vpop.f32.mrf.mxu1 }
 0x11f   :  { %v120_v56 = vadd.f32 128.0, %v119_v55 }
 0x121   :  { %122 = vst [vmem:[%s289_s6] sm:$0x1] %v120_v56 }

</bundles_post_ra>
